<compile_context>
chip_gen: v7x
topology: tpu7x:2x2x1
jax: 0.10.0
libtpu: 0.0.40
codegen_flags: <defaults>
</compile_context>

<pallas_src>
import jax
import jax.numpy as jnp
from jax.experimental import pallas as pl
from jax.experimental.pallas import tpu as pltpu

_SUBLANE = 8          # sublane granularity for the row (M) axis
_MAX_TILE_M = 1024    # measured mem-bound roofline: 512 -> ~85%, 1024 -> ~86%
_PALLAS_MIN_ROWS = 256  # below this, fixed pallas_call overhead dominates -> einsum


def _round_up(v, m):
    return ((v + m - 1) // m) * m


def _attention_linear_kernel(x_ref, w_ref, o_ref):
    # One (tile_m, F) @ (F, L) matmul per grid step on the MXU.
    # Weight block index is (0, 0) for every step -> stays resident in VMEM.
    o_ref[...] = jnp.dot(
        x_ref[...], w_ref[...], preferred_element_type=jnp.float32
    ).astype(o_ref.dtype)
    # TODO(synk): in the full seq2seq decoder, fuse the downstream softmax over
    # L (and the context matvec) here so the (M, L) scores never touch HBM;
    # if fused, mask the ragged last-block rows before any reduction.


def prepare_attention_weight(weight):
    """One-time weight prep, hoisted out of the hot path: (L, F) -> (F, L).

    No lane padding (see header). Keep the weight in the caller's dtype; if the
    surrounding decoder already runs bf16, pass a bf16 weight here (the matmul
    still accumulates in f32 via preferred_element_type)."""
    out_dim, in_dim = weight.shape
    return weight.T, out_dim


def attention_forward(x, w_prepared, *, force_pallas=False):
    """y = x @ W.T  -- same semantics as torch.nn.Linear(F, L, bias=False).

    x: (..., F) -> returns (..., L)."""
    w_t, out_dim = w_prepared
    in_dim = x.shape[-1]
    assert w_t.shape == (in_dim, out_dim)

    lead_shape = x.shape[:-1]
    m = 1
    for d in lead_shape:
        m *= d

    # Latency path (e.g. single decode step, m ~ batch): a few hundred FLOPs
    # per row; plain einsum avoids the fixed kernel-launch/grid overhead.
    if m < _PALLAS_MIN_ROWS and not force_pallas:
        return jnp.einsum("...f,fl->...l", x, w_t).astype(x.dtype)

    x2d = x.reshape(m, in_dim)

    # Fixed-size row tiles, capped so grid_m >= 2 (both v7x TCs get work).
    # Per-tile VMEM (double-buffered x + out + resident weight) is < 1 MiB even
    # at tile_m = 1024 with F = 80, L = 8 -> huge headroom on every generation.
    tile_m = min(_MAX_TILE_M, _round_up(max(pl.cdiv(m, 2), 1), _SUBLANE))
    grid_m = pl.cdiv(m, tile_m)  # ragged last block handled by Pallas masking

    y2d = pl.pallas_call(
        _attention_linear_kernel,
        out_shape=jax.ShapeDtypeStruct((m, out_dim), x.dtype),
        grid=(grid_m,),
        in_specs=[
            pl.BlockSpec((tile_m, in_dim), lambda i: (i, 0)),    # x row tile
            pl.BlockSpec((in_dim, out_dim), lambda i: (0, 0)),   # weight resident
        ],
        out_specs=pl.BlockSpec((tile_m, out_dim), lambda i: (i, 0)),
        compiler_params=pltpu.CompilerParams(
            dimension_semantics=("parallel",),  # independent M tiles -> 2 TCs on v7x
        ),
    )(x2d, w_t)

    return y2d.reshape(*lead_shape, out_dim)


if __name__ == "__main__":
    # Module hyper-params (small, consistent with the forward's expected input dim)
    hidden_dim = 32
    embedding_dim = 16
    max_length = 8
    in_dim = hidden_dim * 2 + embedding_dim  # 80

    key = jax.random.PRNGKey(0)
    kx1, kx2, kw = jax.random.split(key, 3)

    # Deterministic parameter init (mimics Linear(hidden*2+emb, max_length, bias=False))
    bound = 1.0 / jnp.sqrt(in_dim)
    weight = jax.random.uniform(
        kw, (max_length, in_dim), dtype=jnp.float32, minval=-bound, maxval=bound
    )

    # One-time weight prep (transpose only) -- outside the hot path.
    w_prepared = prepare_attention_weight(weight)

    # Case 1: tiny decode-like shape (batch=2, seq=8). Auto-dispatch takes the
    # einsum latency path; force_pallas=True exercises the kernel at this size.
    x_small = jax.random.normal(kx1, (2, 8, in_dim), dtype=jnp.float32)
    y_small_auto = attention_forward(x_small, w_prepared)
    y_small_pallas = attention_forward(x_small, w_prepared, force_pallas=True)
    jax.block_until_ready((y_small_auto, y_small_pallas))
    ref_small = jnp.einsum("bsf,lf->bsl", x_small, weight)
    assert y_small_auto.shape == (2, 8, max_length)
    assert y_small_pallas.shape == (2, 8, max_length)
    assert jnp.allclose(y_small_auto, ref_small, atol=1e-4, rtol=1e-4)
    assert jnp.allclose(y_small_pallas, ref_small, atol=1e-4, rtol=1e-4)

    # Case 2: larger scoring shape (batch=4, seq=333 -> m=1332). Hits the
    # Pallas path with a multi-step parallel grid and a ragged last row-block.
    x_large = jax.random.normal(kx2, (4, 333, in_dim), dtype=jnp.float32)
    y_large = attention_forward(x_large, w_prepared)
    jax.block_until_ready(y_large)
    ref_large = jnp.einsum("bsf,lf->bsl", x_large, weight)
    assert y_large.shape == (4, 333, max_length)
    assert jnp.allclose(y_large, ref_large, atol=1e-4, rtol=1e-4)

    print("KERNEL_OK")
</pallas_src>

<mosaic_0001>
module attributes {stable_mosaic.version = 11 : i64} {
  func.func @_attention_linear_kernel(%arg0: i32, %arg1: memref<8x80xf32, #tpu.memory_space<vmem>>, %arg2: memref<80x8xf32, #tpu.memory_space<vmem>>, %arg3: memref<8x8xf32, #tpu.memory_space<vmem>>) attributes {dimension_semantics = [#tpu.dimension_semantics<parallel>], iteration_bounds = array<i64: 2>, scalar_prefetch = 0 : i64, scratch_operands = 0 : i64, tpu.core_type = #tpu.core_type<tc>, window_params = [{transform_indices = @transform_0, window_bounds = array<i64: 8, 80>}, {pipeline_mode = #tpu.pipeline_mode<synchronous>, transform_indices = @transform_1, window_bounds = array<i64: 80, 8>}, {transform_indices = @transform_2, window_bounds = array<i64: 8, 8>}]} {
    %c0 = arith.constant 0 : index
    %c0_0 = arith.constant 0 : index
    %0 = vector.load %arg1[%c0, %c0_0] : memref<8x80xf32, #tpu.memory_space<vmem>>, vector<8x80xf32>
    %c0_1 = arith.constant 0 : index
    %c0_2 = arith.constant 0 : index
    %1 = vector.load %arg2[%c0_1, %c0_2] : memref<80x8xf32, #tpu.memory_space<vmem>>, vector<80x8xf32>
    %cst = arith.constant dense<0.000000e+00> : vector<8x8xf32>
    %2 = tpu.matmul %0, %1, %cst {dimension_numbers = #tpu.dot_dimension_numbers<[1], [0], [0], [1], [0, 0, 1, 1], [], []>} : vector<8x80xf32>, vector<80x8xf32>, vector<8x8xf32> -> vector<8x8xf32>
    %c0_3 = arith.constant 0 : index
    %c0_4 = arith.constant 0 : index
    %3 = vector.load %arg3[%c0_3, %c0_4] : memref<8x8xf32, #tpu.memory_space<vmem>>, vector<8x8xf32>
    tpu.vector_store %arg3[%c0_3, %c0_4], %2 {strides = array<i32>} : memref<8x8xf32, #tpu.memory_space<vmem>>, vector<8x8xf32>,
    return
  }
  func.func @transform_0(%arg0: i32) -> (i32, i32) {
    %c0_i32 = arith.constant 0 : i32
    %c0_i32_0 = arith.constant 0 : i32
    return %arg0, %c0_i32 : i32, i32
  }
  func.func @transform_1(%arg0: i32) -> (i32, i32) {
    %c0_i32 = arith.constant 0 : i32
    %c0_i32_0 = arith.constant 0 : i32
    %c0_i32_1 = arith.constant 0 : i32
    return %c0_i32, %c0_i32_0 : i32, i32
  }
  func.func @transform_2(%arg0: i32) -> (i32, i32) {
    %c0_i32 = arith.constant 0 : i32
    %c0_i32_0 = arith.constant 0 : i32
    return %arg0, %c0_i32 : i32, i32
  }
}

</mosaic_0001>

<bundles_post_ra>
// kernel: tpu_custom_call.1
= control target key start
LH: loop header
LB: loop body
LE: loop exit
PB: predicated region body
PF: predicated region fallthrough
CT: control target
= control target key end

     0   :  { %s375_s9 = smov 0   ;;  %s422_s0 = inlined_call_operand.vmem [shape: f32[16,80], index: 0, kind: input, shape index: {}]   ;;  %s423_s1 = inlined_call_operand.vmem [shape: f32[80,8], index: 1, kind: input, shape index: {}]   ;;  %s424_s2 = inlined_call_operand.vmem [shape: f32[16,8], index: 2, kind: output, shape index: {}]  }
   0x1 LB: > { %s279_s10 = sadd.s32 4294967295, %s355_s9   ;;  %p283_p0 = scmp.ge.s32.totalorder %s355_s9, 1  ;;  %s355_s9 = sphi %s375_s9, %s12_s9  }
   0x2   : > { %p111_p1 = scmp.lt.s32.totalorder %s355_s9, 3 }
   0x4   : > { %p112_p2 = pnand %p283_p0, %p111_p1 }
   0x5   : > { %v140_v0 = vld [vmem:[%s423_s1] sm:$0xff] (!%p112_p2)  ;;  %v141_v1 = vld [vmem:[%s423_s1 + $0x8] sm:$0xff] (!%p112_p2)  ;;  %v142_v2 = vld [vmem:[%s423_s1 + $0x10] sm:$0xff] (!%p112_p2)  ;;  %v357_v3 = vmov (!%p112_p2), 0.0|0.0   ;;  %vm358_vm0 = vmmov (!%p112_p2), 0   ;;  %v359_v6 = vmov (!%p112_p2), 0.0  }
   0x6   : > { %115 = sbr.rel (%p112_p2) target bundleno = 240 (0xf0), region = 28  ;;  %323 = vmatprep.subr.bf16.mxu0 (!%p112_p2), %v357_v3  ;;  %v324_v4 = vpack.c.bf16 (!%p112_p2), %v141_v1, %v140_v0  ;;  %v143_v5 = vld [vmem:[%s423_s1 + $0x18] sm:$0xff] (!%p112_p2)  ;;  %320 = vmatprep.mubr.msk.f32.mxu0 (!%p112_p2), %vm358_vm0, %v359_v6  ;;  %v144_v8 = vld [vmem:[%s423_s1 + $0x20] sm:$0xff] (!%p112_p2)  ;;  %v145_v9 = vld [vmem:[%s423_s1 + $0x28] sm:$0xff] (!%p112_p2)  ;;  %p131_p3 = scmp.lt.s32.totalorder (!%p112_p2), %s279_s10, 1  ;;  %vm150_vm1 = vcmask (!%p112_p2), 654336  }
   0x7   : > { %v327_v7 = vpack.c.bf16 (!%p112_p2), %v143_v5, %v142_v2  ;;  %v330_v10 = vpack.c.bf16 (!%p112_p2), %v145_v9, %v144_v8  ;;  %v146_v11 = vld [vmem:[%s423_s1 + $0x30] sm:$0xff] (!%p112_p2)  ;;  %v147_v12 = vld [vmem:[%s423_s1 + $0x38] sm:$0xff] (!%p112_p2)  ;;  %v148_v14 = vld [vmem:[%s423_s1 + $0x40] sm:$0xff] (!%p112_p2)  ;;  %vm224_vm2 = vcmask (!%p112_p2), 64512  }
   0x8   : > { %325 = vmatpush3.bf16.msra.mxu0 (!%p112_p2), %v324_v4  ;;  %v333_v13 = vpack.c.bf16 (!%p112_p2), %v147_v12, %v146_v11  ;;  %v149_v15 = vld [vmem:[%s423_s1 + $0x48] sm:$0xff] (!%p112_p2) }
   0x9   : > { %326 = vmatprep.subr.bf16.mxu0 (!%p112_p2), %v357_v3  ;;  %v336_v16 = vpack.c.bf16 (!%p112_p2), %v149_v15, %v148_v14 }
   0xc   : > { %328 = vmatpush3.bf16.msra.mxu0 (!%p112_p2), %v327_v7 }
   0xd   : > { %329 = vmatprep.subr.bf16.mxu0 %v357_v3  ;;  %s426_s10 = smov (!%p131_p3, %s279_s10), 1 }
   0xe   : > { %s284_s3 = sshll.u32 %s426_s10, 3 }
   0xf   : > { %s134_s6 = scalar_lea.vmem %s422_s0, %s284_s3  ;;  %s138_s11 = scalar_lea.vmem %s424_s2, %s284_s3 }
  0x10   : > { %331 = vmatpush3.bf16.msra.mxu0 %v330_v10  ;;  %v139_v17 = vld [vmem:[%s134_s6] sm:$0xff] }
  0x11   : > { %332 = vmatprep.subr.bf16.mxu0 %v357_v3 }
  0x14   : > { %334 = vmatpush3.bf16.msra.mxu0 %v333_v13 }
  0x15   : > { %335 = vmatprep.subr.bf16.mxu0 %v357_v3 }
  0x18   : > { %337 = vmatpush3.bf16.msra.mxu0 %v336_v16 }
  0x1b   : > { %321 = vmatmul.mubr.msk.f32.vlgmr.msra.gmra.mrb[0].mxu0 %vm150_vm1, %v139_v17 }
  0xee   : > { %v220_v18 = vpop.f32.mrb[0].mxu0 }
  0xef   : > { %225 = vst.msk [vmem:[%s138_s11] sm:$0xff] %vm224_vm2, %v220_v18  ;;  %v322_v19 = vpop.f32.mrb[1].mxu0 }
  0xf0 PF: > { %s12_s9 = sadd.s32 1, %s355_s9  }
  0xf1   : > { %p9_p4 = scmp.ge.s32.totalorder %s12_s9, 4  }
  0xf3   :  { %11 = sbr.rel (!%p9_p4) target bundleno = 1 (0x1), region = 58 }

</bundles_post_ra>
